<compile_context>
chip_gen: v7x
topology: tpu7x:2x2x1
jax: 0.10.0
libtpu: 0.0.40
codegen_flags: <defaults>
</compile_context>

<pallas_src>
import functools
import math

import jax
import jax.numpy as jnp
from jax import lax
from jax.experimental import pallas as pl
from jax.experimental.pallas import tpu as pltpu


def _round_up(x, m):
    return ((x + m - 1) // m) * m


def _choose_batch_tile(B, batch_tile):
    """Pick the per-grid-step batch tile.

    * Small B: a single whole-batch tile (splitting tiny batches only adds the
      per-grid-step overhead).
    * Large B: lane-aligned (multiple of 128) tiles up to `batch_tile`, capped
      so there are at least 2 tiles -- and, when the tile count is small, an
      even number of them -- so v7x's two TensorCores stay balanced under
      dimension_semantics=("parallel",).  Irrelevant on v5e/v6e (single TC).
    """
    assert batch_tile % 128 == 0, "batch_tile must be a multiple of 128"
    if B <= 256:
        return B
    tb = min(batch_tile, _round_up(pl.cdiv(B, 2), 128))
    n = pl.cdiv(B, tb)
    if n % 2 == 1 and 1 < n <= 8:
        # Try the next even tile count (small odd counts waste one v7x core).
        tb_even = max(128, _round_up(pl.cdiv(B, n + 1), 128))
        if pl.cdiv(B, tb_even) % 2 == 0:
            tb = tb_even
    return tb


def _mlp_kernel(n_layers, x_ref, *refs):
    """refs = (w0, b0, ..., w_{L-1}, b_{L-1}, out_ref).

    x_ref:  (TB, in_features)            -- natural row-major input block
    w_i:    (out_i, in_i)   (hidden)     -- PyTorch nn.Linear layout
    b_i:    (out_i, 1)      (hidden)
    w_last: (N, 1)                       -- final weight as a column
    b_last: (1, 1)
    out:    (1, TB)                      -- lane-dense sigmoid output
    """
    out_ref = refs[-1]
    p = refs[:-1]

    x = x_ref[...].astype(jnp.float32)                       # (TB, in)

    # First layer: contract the shared feature axis (dim 1 of both operands),
    # so the transpose to (features, batch) happens inside the MXU for free.
    w0 = p[0][...].astype(jnp.float32)                       # (out0, in)
    b0 = p[1][...].astype(jnp.float32)                       # (out0, 1)
    h = lax.dot_general(w0, x, (((1,), (1,)), ((), ())),
                        preferred_element_type=jnp.float32) + b0
    h = jnp.maximum(h, 0.0)                                   # (out0, TB)

    # Remaining hidden layers: MXU matmul + VPU bias/ReLU.
    for i in range(1, n_layers - 1):
        w = p[2 * i][...].astype(jnp.float32)                 # (out, in)
        b = p[2 * i + 1][...].astype(jnp.float32)             # (out, 1)
        h = jnp.dot(w, h, preferred_element_type=jnp.float32) + b
        h = jnp.maximum(h, 0.0)

    # Final layer: elementwise multiply + sublane reduce (no N=1 MXU pass).
    w_last = p[2 * (n_layers - 1)][...].astype(jnp.float32)      # (N, 1)
    b_last = p[2 * (n_layers - 1) + 1][...].astype(jnp.float32)  # (1, 1)
    logits = jnp.sum(h * w_last, axis=0, keepdims=True) + b_last  # (1, TB)
    out_ref[...] = jax.nn.sigmoid(logits).astype(out_ref.dtype)   # EUP sigmoid


def mlp_forward(x, params, *, batch_tile=4096, input_dtype=None):
    """x: (B, input_features).
    params: list of (w, b) in PyTorch nn.Linear layout: w=(out, in), b=(out,).
    Returns (B, 1) f32, matching the torch MLP forward pass.

    input_dtype: optionally cast x (e.g. jnp.bfloat16 on v6e/v7x) to halve the
    HBM-bound input stream; accumulation and elementwise math stay f32.
    """
    B, in_features = x.shape
    n_layers = len(params)
    assert n_layers >= 2, "MLP needs at least one hidden layer + output layer"

    if input_dtype is not None and x.dtype != input_dtype:
        x = x.astype(input_dtype)

    TB = _choose_batch_tile(B, batch_tile)
    num_tiles = pl.cdiv(B, TB)   # ragged last block handled by Pallas masking

    # Flatten params into the layout the kernel expects.
    flat = []
    for i, (w, b) in enumerate(params):
        if i < n_layers - 1:
            flat.append(w)                        # (out, in) for the MXU
            flat.append(b.reshape(-1, 1))         # (out, 1) broadcasts over lanes
        else:
            flat.append(jnp.transpose(w))         # (N, 1) column for VPU mul
            flat.append(b.reshape(1, 1))          # (1, 1)

    vmem = pltpu.MemorySpace.VMEM

    def resident_spec(a):
        nd = a.ndim
        # Constant index_map -> weight/bias stays VMEM-resident across the grid.
        return pl.BlockSpec(a.shape, lambda i, _nd=nd: (0,) * _nd, memory_space=vmem)

    # Contiguous row-major input block; last dim equals the full array dim.
    in_specs = [pl.BlockSpec((TB, in_features), lambda i: (i, 0), memory_space=vmem)]
    in_specs += [resident_spec(a) for a in flat]
    out_specs = pl.BlockSpec((1, TB), lambda i: (0, i), memory_space=vmem)

    flops = 2 * B * sum(int(w.shape[0]) * int(w.shape[1]) for w, _ in params)
    bytes_accessed = int(
        x.size * x.dtype.itemsize
        + sum(int(a.size) * a.dtype.itemsize for a in flat)
        + B * 4
    )

    kernel = functools.partial(_mlp_kernel, n_layers)
    out = pl.pallas_call(
        kernel,
        grid=(num_tiles,),
        in_specs=in_specs,
        out_specs=out_specs,
        out_shape=jax.ShapeDtypeStruct((1, B), jnp.float32),
        compiler_params=pltpu.CompilerParams(
            dimension_semantics=("parallel",),   # shardable across v7x's 2 TCs
        ),
        cost_estimate=pl.CostEstimate(
            flops=flops, transcendentals=B, bytes_accessed=bytes_accessed
        ),
    )(x, *flat)

    return out.reshape(B, 1)


def init_mlp_params(key, input_features, hidden_layers, neurons_per_layer,
                    dtype=jnp.float32):
    """PyTorch-style nn.Linear init: w=(out, in), b=(out,), U(-1/sqrt(fan_in), ...)."""
    dims = [input_features] + [neurons_per_layer] * hidden_layers + [1]
    params = []
    for i in range(len(dims) - 1):
        key, kw, kb = jax.random.split(key, 3)
        bound = 1.0 / math.sqrt(dims[i])
        w = jax.random.uniform(kw, (dims[i + 1], dims[i]), dtype, -bound, bound)
        b = jax.random.uniform(kb, (dims[i + 1],), dtype, -bound, bound)
        params.append((w, b))
    return params


def mlp_reference(x, params):
    """Pure-JAX reference matching the torch module semantics."""
    h = x
    n = len(params)
    for i, (w, b) in enumerate(params):
        h = h @ w.T + b
        h = jnp.maximum(h, 0.0) if i < n - 1 else jax.nn.sigmoid(h)
    return h


if __name__ == "__main__":
    # MLP(input_features=16, hidden_layers=2, neurons_per_layer=32), batch=8.
    B, input_features, hidden_layers, neurons_per_layer = 8, 16, 2, 32

    key = jax.random.PRNGKey(0)
    key, kx = jax.random.split(key)
    x = jax.random.normal(kx, (B, input_features), jnp.float32)
    params = init_mlp_params(key, input_features, hidden_layers, neurons_per_layer)

    out = jax.block_until_ready(mlp_forward(x, params))
    ref = mlp_reference(x, params)
    assert out.shape == (B, 1)
    assert jnp.allclose(out, ref, atol=1e-5, rtol=1e-5)

    # Larger batch exercises the multi-tile grid path (lane-aligned tiles,
    # ragged last block, VMEM-resident weights, even tile count for v7x).
    B2 = 300
    key, kx2 = jax.random.split(key)
    x2 = jax.random.normal(kx2, (B2, input_features), jnp.float32)
    out2 = jax.block_until_ready(mlp_forward(x2, params))
    ref2 = mlp_reference(x2, params)
    assert out2.shape == (B2, 1)
    assert jnp.allclose(out2, ref2, atol=1e-5, rtol=1e-5)

    # Even larger batch with a capped tile -> 4 tiles (even count), ragged tail.
    B3 = 1000
    key, kx3 = jax.random.split(key)
    x3 = jax.random.normal(kx3, (B3, input_features), jnp.float32)
    out3 = jax.block_until_ready(mlp_forward(x3, params, batch_tile=256))
    ref3 = mlp_reference(x3, params)
    assert out3.shape == (B3, 1)
    assert jnp.allclose(out3, ref3, atol=1e-5, rtol=1e-5)

    print("KERNEL_OK")
</pallas_src>

<mosaic_0001>
module attributes {stable_mosaic.version = 11 : i64} {
  func.func @_mlp_kernel(%arg0: i32, %arg1: memref<8x16xf32, #tpu.memory_space<vmem>>, %arg2: memref<32x16xf32, #tpu.memory_space<vmem>>, %arg3: memref<32x1xf32, #tpu.memory_space<vmem>>, %arg4: memref<32x32xf32, #tpu.memory_space<vmem>>, %arg5: memref<32x1xf32, #tpu.memory_space<vmem>>, %arg6: memref<32x1xf32, #tpu.memory_space<vmem>>, %arg7: memref<1x1xf32, #tpu.memory_space<vmem>>, %arg8: memref<1x8xf32, #tpu.memory_space<vmem>>) attributes {dimension_semantics = [#tpu.dimension_semantics<parallel>], iteration_bounds = array<i64: 1>, scalar_prefetch = 0 : i64, scratch_operands = 0 : i64, tpu.core_type = #tpu.core_type<tc>, window_params = [{transform_indices = @transform_0, window_bounds = array<i64: 8, 16>}, {pipeline_mode = #tpu.pipeline_mode<synchronous>, transform_indices = @transform_1, window_bounds = array<i64: 32, 16>}, {pipeline_mode = #tpu.pipeline_mode<synchronous>, transform_indices = @transform_2, window_bounds = array<i64: 32, 1>}, {pipeline_mode = #tpu.pipeline_mode<synchronous>, transform_indices = @transform_3, window_bounds = array<i64: 32, 32>}, {pipeline_mode = #tpu.pipeline_mode<synchronous>, transform_indices = @transform_4, window_bounds = array<i64: 32, 1>}, {pipeline_mode = #tpu.pipeline_mode<synchronous>, transform_indices = @transform_5, window_bounds = array<i64: 32, 1>}, {pipeline_mode = #tpu.pipeline_mode<synchronous>, transform_indices = @transform_6, window_bounds = array<i64: 1, 1>}, {transform_indices = @transform_7, window_bounds = array<i64: 1, 8>}]} {
    %c0 = arith.constant 0 : index
    %c0_0 = arith.constant 0 : index
    %0 = vector.load %arg1[%c0, %c0_0] : memref<8x16xf32, #tpu.memory_space<vmem>>, vector<8x16xf32>
    %c0_1 = arith.constant 0 : index
    %c0_2 = arith.constant 0 : index
    %1 = vector.load %arg2[%c0_1, %c0_2] : memref<32x16xf32, #tpu.memory_space<vmem>>, vector<32x16xf32>
    %c0_3 = arith.constant 0 : index
    %c0_4 = arith.constant 0 : index
    %2 = vector.load %arg3[%c0_3, %c0_4] : memref<32x1xf32, #tpu.memory_space<vmem>>, vector<32x1xf32>
    %cst = arith.constant dense<0.000000e+00> : vector<32x8xf32>
    %3 = tpu.matmul %1, %0, %cst {dimension_numbers = #tpu.dot_dimension_numbers<[1], [1], [0], [0], [0, 0, 1, 0], [], []>} : vector<32x16xf32>, vector<8x16xf32>, vector<32x8xf32> -> vector<32x8xf32>
    %4 = vector.broadcast %2 : vector<32x1xf32> to vector<32x8xf32>
    %5 = arith.addf %3, %4 : vector<32x8xf32>
    %cst_5 = arith.constant 0.000000e+00 : f32
    %6 = vector.broadcast %cst_5 : f32 to vector<32x8xf32>
    %7 = arith.maximumf %5, %6 : vector<32x8xf32>
    %c0_6 = arith.constant 0 : index
    %c0_7 = arith.constant 0 : index
    %8 = vector.load %arg4[%c0_6, %c0_7] : memref<32x32xf32, #tpu.memory_space<vmem>>, vector<32x32xf32>
    %c0_8 = arith.constant 0 : index
    %c0_9 = arith.constant 0 : index
    %9 = vector.load %arg5[%c0_8, %c0_9] : memref<32x1xf32, #tpu.memory_space<vmem>>, vector<32x1xf32>
    %cst_10 = arith.constant dense<0.000000e+00> : vector<32x8xf32>
    %10 = tpu.matmul %8, %7, %cst_10 {dimension_numbers = #tpu.dot_dimension_numbers<[1], [0], [0], [1], [0, 0, 1, 1], [], []>} : vector<32x32xf32>, vector<32x8xf32>, vector<32x8xf32> -> vector<32x8xf32>
    %11 = vector.broadcast %9 : vector<32x1xf32> to vector<32x8xf32>
    %12 = arith.addf %10, %11 : vector<32x8xf32>
    %cst_11 = arith.constant 0.000000e+00 : f32
    %13 = vector.broadcast %cst_11 : f32 to vector<32x8xf32>
    %14 = arith.maximumf %12, %13 : vector<32x8xf32>
    %c0_12 = arith.constant 0 : index
    %c0_13 = arith.constant 0 : index
    %15 = vector.load %arg6[%c0_12, %c0_13] : memref<32x1xf32, #tpu.memory_space<vmem>>, vector<32x1xf32>
    %c0_14 = arith.constant 0 : index
    %c0_15 = arith.constant 0 : index
    %16 = vector.load %arg7[%c0_14, %c0_15] : memref<1x1xf32, #tpu.memory_space<vmem>>, vector<1x1xf32>
    %17 = vector.broadcast %15 : vector<32x1xf32> to vector<32x8xf32>
    %18 = arith.mulf %14, %17 : vector<32x8xf32>
    %cst_16 = arith.constant dense<0.000000e+00> : vector<8xf32>
    %19 = vector.multi_reduction <add>, %18, %cst_16 [0] : vector<32x8xf32> to vector<8xf32>
    %20 = vector.shape_cast %19 : vector<8xf32> to vector<1x8xf32>
    %21 = vector.broadcast %16 : vector<1x1xf32> to vector<1x8xf32>
    %22 = arith.addf %20, %21 : vector<1x8xf32>
    %23 = arith.negf %22 : vector<1x8xf32>
    %24 = math.exp %23 : vector<1x8xf32>
    %cst_17 = arith.constant 1.000000e+00 : f32
    %25 = vector.broadcast %cst_17 : f32 to vector<1x8xf32>
    %26 = arith.addf %25, %24 : vector<1x8xf32>
    %27 = arith.divf %25, %26 : vector<1x8xf32>
    %c0_18 = arith.constant 0 : index
    %c0_19 = arith.constant 0 : index
    %28 = vector.load %arg8[%c0_18, %c0_19] : memref<1x8xf32, #tpu.memory_space<vmem>>, vector<1x8xf32>
    tpu.vector_store %arg8[%c0_18, %c0_19], %27 {strides = array<i32>} : memref<1x8xf32, #tpu.memory_space<vmem>>, vector<1x8xf32>,
    return
  }
  func.func @transform_0(%arg0: i32) -> (i32, i32) {
    %c0_i32 = arith.constant 0 : i32
    %c0_i32_0 = arith.constant 0 : i32
    return %arg0, %c0_i32 : i32, i32
  }
  func.func @transform_1(%arg0: i32) -> (i32, i32) {
    %c0_i32 = arith.constant 0 : i32
    %c0_i32_0 = arith.constant 0 : i32
    %c0_i32_1 = arith.constant 0 : i32
    return %c0_i32, %c0_i32_0 : i32, i32
  }
  func.func @transform_2(%arg0: i32) -> (i32, i32) {
    %c0_i32 = arith.constant 0 : i32
    %c0_i32_0 = arith.constant 0 : i32
    %c0_i32_1 = arith.constant 0 : i32
    return %c0_i32, %c0_i32_0 : i32, i32
  }
  func.func @transform_3(%arg0: i32) -> (i32, i32) {
    %c0_i32 = arith.constant 0 : i32
    %c0_i32_0 = arith.constant 0 : i32
    %c0_i32_1 = arith.constant 0 : i32
    return %c0_i32, %c0_i32_0 : i32, i32
  }
  func.func @transform_4(%arg0: i32) -> (i32, i32) {
    %c0_i32 = arith.constant 0 : i32
    %c0_i32_0 = arith.constant 0 : i32
    %c0_i32_1 = arith.constant 0 : i32
    return %c0_i32, %c0_i32_0 : i32, i32
  }
  func.func @transform_5(%arg0: i32) -> (i32, i32) {
    %c0_i32 = arith.constant 0 : i32
    %c0_i32_0 = arith.constant 0 : i32
    %c0_i32_1 = arith.constant 0 : i32
    return %c0_i32, %c0_i32_0 : i32, i32
  }
  func.func @transform_6(%arg0: i32) -> (i32, i32) {
    %c0_i32 = arith.constant 0 : i32
    %c0_i32_0 = arith.constant 0 : i32
    %c0_i32_1 = arith.constant 0 : i32
    return %c0_i32, %c0_i32_0 : i32, i32
  }
  func.func @transform_7(%arg0: i32) -> (i32, i32) {
    %c0_i32 = arith.constant 0 : i32
    %c0_i32_0 = arith.constant 0 : i32
    return %c0_i32, %arg0 : i32, i32
  }
}

</mosaic_0001>

<bundles_post_ra>
// kernel: tpu_custom_call.1
= control target key start
LH: loop header
LB: loop body
LE: loop exit
PB: predicated region body
PF: predicated region fallthrough
CT: control target
= control target key end

     0   :  { %s587_s0 = inlined_call_operand.vmem [shape: f32[8,16], index: 0, kind: input, shape index: {}]   ;;  %s588_s1 = inlined_call_operand.vmem [shape: f32[32,16], index: 1, kind: input, shape index: {}]   ;;  %s589_s2 = inlined_call_operand.vmem [shape: f32[32,1], index: 2, kind: input, shape index: {}]   ;;  %s590_s3 = inlined_call_operand.vmem [shape: f32[32,32], index: 3, kind: input, shape index: {}]   ;;  %s591_s4 = inlined_call_operand.vmem [shape: f32[32,1], index: 4, kind: input, shape index: {}]   ;;  %s592_s5 = inlined_call_operand.vmem [shape: f32[32,1], index: 5, kind: input, shape index: {}]   ;;  %s593_s6 = inlined_call_operand.<no memory space> [shape: f32[1,1], index: 6, kind: input, shape index: {}]   ;;  %s594_s7 = inlined_call_operand.hbm [shape: f32[1,8], index: 7, kind: output, shape index: {}]  }
   0x1   :  { %v12_v0 = vstv %s593_s6 }
   0x2   :  { %13 = vst [vmem:[#allocation2] sm:$0x1] %v12_v0 }
   0x3   :  { %v29_v1 = vld [vmem:[%s587_s0] sm:$0xff]  ;;  %vm58_vm0 = vcmask 130048   ;;  %v31_v4 = vld [vmem:[%s588_s1 + $0x8] sm:$0xff]  ;;  %v453_v5 = vmov 0   ;;  %v36_v6 = vld [vmem:[%s589_s2 + $0x10] sm:$0xff] }
   0x4   :  { %v30_v2 = vld [vmem:[%s588_s1] sm:$0xff]  ;;  %391 = vmatprep.subr.msk.mxu0 %vm58_vm0, %v29_v1  ;;  %423 = vset.pattern.permute.xlu0 %v453_v5  ;;  %v32_v7 = vld [vmem:[%s588_s1 + $0x10] sm:$0xff]  ;;  %v35_v8 = vld [vmem:[%s589_s2 + $0x8] sm:$0xff] }
   0x5   :  { %393 = vmatprep.mubr.msk.f32.mxu0 %vm58_vm0, %v30_v2  ;;  %v34_v3 = vld [vmem:[%s589_s2] sm:$0xff]  ;;  %392 = vmatpush3.xpose.msk.msra.mxu0 %vm58_vm0, %v29_v1  ;;  %v37_v9 = vld [vmem:[%s589_s2 + $0x18] sm:$0xff] }
   0x6   :  { %40 = vperm.xlu0 %423, %v34_v3   ;;  %424 = vset.pattern.permute.xlu1 %v453_v5  ;;  %v33_v10 = vld [vmem:[%s588_s1 + $0x18] sm:$0xff] }
   0x7   :  { %50 = vperm.xlu1 %424, %v36_v6  }
   0x8   :  { %394 = vmatmul.mubr.msk.f32.vlgmr.msra.gmra.mrb[0].mxu0 %vm58_vm0, %v31_v4 }
   0x9   :  { %396 = vmatprep.mubr.msk.f32.mxu0 %vm58_vm0, %v32_v7 }
   0xa   :  { %14 = vsyncpa [#allocation4], 0  ;;  %45 = vperm.xlu0 %423, %v35_v8   ;;  %v167_v11 = vld [vmem:[%s591_s4] sm:$0xff]  ;;  %v168_v12 = vld [vmem:[%s591_s4 + $0x8] sm:$0xff]  ;;  %vm191_vm1 = vcmask 261120   ;;  %vm322_vm2 = vcmask 64512   ;;  %v341_v8 = vlaneseq }
   0xb   :  { %55 = vperm.xlu1 %424, %v37_v9   ;;  %v169_v13 = vld [vmem:[%s591_s4 + $0x10] sm:$0xff]  ;;  %v170_v14 = vld [vmem:[%s591_s4 + $0x18] sm:$0xff]  ;;  %v293_v15 = vld [vmem:[%s592_s5] sm:$0xff]  ;;  %vm352_vm3 = vcmask 57344  }
   0xc   :  { %397 = vmatmul.mubr.msk.f32.gmra.mrb[2].mxu0 %vm58_vm0, %v33_v10  ;;  %v294_v16 = vld [vmem:[%s592_s5 + $0x8] sm:$0xff]  ;;  %v295_v17 = vld [vmem:[%s592_s5 + $0x10] sm:$0xff]  ;;  %v296_v18 = vld [vmem:[%s592_s5 + $0x18] sm:$0xff] }
   0xd   :  { %v297_v19 = vld [vmem:[#allocation2] sm:$0x1]  ;;  %v164_v39 = vld [vmem:[%s590_s3 + $0x8] sm:$0xff]  ;;  %v165_v40 = vld [vmem:[%s590_s3 + $0x10] sm:$0xff] }
   0xe   :  { %173 = vperm.xlu0 %423, %v167_v11   ;;  %v163_v20 = vld [vmem:[%s590_s3] sm:$0xff]  ;;  %v166_v41 = vld [vmem:[%s590_s3 + $0x18] sm:$0xff]  ;;  %v342_v11 = vshrl.u32 %v341_v8, 7  ;;  %s454_s3 = smov [#allocation3]  }
   0xf   :  { %178 = vperm.xlu1 %424, %v168_v12   ;;  %407 = vmatprep.mubr.msk.f32.mxu1 %vm191_vm1, %v163_v20  ;;  %s360_s14 = sshll.u32 %s454_s3, 4  ;;  %s361_s14 = int_to_ptr.vmem [resolvable:$true] %s360_s14 }
  0x10   :  { %s429_s15 = scalar_lea.vmem %s361_s14, 16  ;;  %s433_s16 = scalar_lea.vmem %s361_s14, 32 }
  0x11   :  { %p430_p0 = scmp.ne.s32.totalorder %s361_s14, %s429_s15  ;;  %p434_p1 = scmp.lt.s32.totalorder %s361_s14, %s361_s14 }
  0x12   :  { %183 = vperm.xlu0 %423, %v169_v13   ;;  %p435_p2 = scmp.lt.s32.totalorder %s433_s16, %s429_s15 }
  0x13   :  { %188 = vperm.xlu1 %424, %v170_v14   ;;  %v343_v14 = vsub.s32 0, %v342_v11 }
  0x14   :  { %p436_p3 = por %p435_p2, %p434_p1 }
  0x16   :  { %300 = vperm.xlu0 %423, %v293_v15   ;;  %p437_p4 = pnand %p436_p3, %p430_p0 }
  0x17   :  { %305 = vperm.xlu1 %424, %v294_v16  }
  0x1a   :  { %310 = vperm.xlu0 %423, %v295_v17  }
  0x1b   :  { %315 = vperm.xlu1 %424, %v296_v18  }
  0x1e   :  { %338 = vperm.xlu0 %423, %v297_v19  }
  0x85   :  { %v41_v21 = vpop.permute.xlu0 %40 }
  0x86   :  { %v51_v22 = vpop.permute.xlu1 %50 }
  0x89   :  { %v46_v23 = vpop.permute.xlu0 %45 }
  0x8a   :  { %v56_v29 = vpop.permute.xlu1 %55 }
  0x8d   :  { %v174_v42 = vpop.permute.xlu0 %173 }
  0x8e   :  { %v179_v43 = vpop.permute.xlu1 %178 }
  0x91   :  { %v184_v44 = vpop.permute.xlu0 %183 }
  0x92   :  { %v189_v45 = vpop.permute.xlu1 %188 }
  0x95   :  { %v301_v50 = vpop.permute.xlu0 %300 }
  0x96   :  { %v306_v51 = vpop.permute.xlu1 %305 }
  0x99   :  { %v311_v0 = vpop.permute.xlu0 %310 }
  0x9a   :  { %v316_v1 = vpop.permute.xlu1 %315 }
  0x9d   :  { %v339_v16 = vpop.permute.xlu0 %338 }
  0x9e   :  { %v344_v18 = vrot.slane %v339_v16, %v343_v14 }
  0xdb   :  { %v395_v24 = vpop.f32.mrb[0].mxu0 }
  0xdc   :  { %v146_v25 = vadd.f32 %v395_v24, %v46_v23  ;;  %v140_v26 = vpop.f32.mrb[1].mxu0 }
  0xdd   :  { %v141_v27 = vadd.f32 %v140_v26, %v41_v21 }
  0xde   :  { %v160_v28 = vmax.f32 %v146_v25, 0.0 }
  0xdf   :  { %v159_v30 = vmax.f32 %v141_v27, 0.0  ;;  %v398_v31 = vpop.f32.mrb[2].mxu0 }
  0xe0   :  { %v156_v32 = vadd.f32 %v398_v31, %v56_v29  ;;  %v150_v33 = vpop.f32.mrb[3].mxu0 }
  0xe1   :  { %v151_v34 = vadd.f32 %v150_v33, %v51_v22  ;;  %v413_v35 = vpack.c.bf16 %v160_v28, %v159_v30 }
  0xe2   :  { %v162_v36 = vmax.f32 %v156_v32, 0.0 }
  0xe3   :  { %v161_v37 = vmax.f32 %v151_v34, 0.0  ;;  %414 = vmatprep.subr.bf16.mxu1 %v413_v35 }
  0xe4   :  { %416 = vmatpush3.bf16.msra.mxu1 %v413_v35 }
  0xe5   :  { %v417_v38 = vpack.c.bf16 %v162_v36, %v161_v37 }
  0xe7   :  { %418 = vmatprep.subr.bf16.mxu1 %v417_v38 }
  0xe8   :  { %420 = vmatpush3.bf16.msra.mxu1 %v417_v38 }
  0xeb   :  { %408 = vmatmul.mubr.msk.f32.vlgmr.msra.gmra.mrb[0].mxu1 %vm191_vm1, %v164_v39 }
  0xec   :  { %410 = vmatprep.mubr.msk.f32.mxu1 %vm191_vm1, %v165_v40 }
  0xef   :  { %411 = vmatmul.mubr.msk.f32.gmra.mrb[2].mxu1 %vm191_vm1, %v166_v41 }
 0x1be   :  { %v409_v46 = vpop.f32.mrb[0].mxu1 }
 0x1bf   :  { %v276_v47 = vadd.f32 %v409_v46, %v179_v43  ;;  %v270_v48 = vpop.f32.mrb[1].mxu1 }
 0x1c0   :  { %v271_v49 = vadd.f32 %v270_v48, %v174_v42 }
 0x1c1   :  { %v290_v52 = vmax.f32 %v276_v47, 0.0 }
 0x1c2   :  { %v289_v53 = vmax.f32 %v271_v49, 0.0  ;;  %v412_v54 = vpop.f32.mrb[2].mxu1 }
 0x1c3   :  { %v319_v55 = vmul.f32 %v306_v51, %v290_v52  ;;  %v286_v56 = vadd.f32 %v412_v54, %v189_v45  ;;  %v280_v57 = vpop.f32.mrb[3].mxu1 }
 0x1c4   :  { %v318_v58 = vmul.f32 %v301_v50, %v289_v53  ;;  %v281_v59 = vadd.f32 %v280_v57, %v184_v44 }
 0x1c5   :  { %v324_v60 = vsel %vm322_vm2, %v319_v55, 0.0  ;;  %v292_v61 = vmax.f32 %v286_v56, 0.0 }
 0x1c6   :  { %v323_v62 = vsel %vm322_vm2, %v318_v58, 0.0  ;;  %v291_v63 = vmax.f32 %v281_v59, 0.0 }
 0x1c7   :  { %v325_v2 = vadd.f32 %v324_v60, %v323_v62  ;;  %v321_v3 = vmul.f32 %v316_v1, %v292_v61 }
 0x1c8   :  { %v320_v4 = vmul.f32 %v311_v0, %v291_v63 }
 0x1c9   :  { %v328_v7 = vsel %vm322_vm2, %v321_v3, 0.0 }
 0x1ca   :  { %v326_v5 = vsel %vm322_vm2, %v320_v4, 0.0 }
 0x1cb   :  { %v327_v6 = vadd.f32 %v326_v5, %v325_v2 }
 0x1cd   :  { %v329_v9 = vadd.f32 %v328_v7, %v327_v6 }
 0x1cf   :  { %v330_v10 = vrot.slane %v329_v9, 4 }
 0x1d1   :  { %v331_v12 = vadd.f32 %v330_v10, %v329_v9 }
 0x1d3   :  { %v332_v13 = vrot.slane %v331_v12, 2 }
 0x1d5   :  { %v333_v15 = vadd.f32 %v332_v13, %v331_v12 }
 0x1d7   :  { %v334_v17 = vrot.slane %v333_v15, 1 }
 0x1d9   :  { %v335_v19 = vadd.f32 %v334_v17, %v333_v15 }
 0x1db   :  { %v345_v20 = vadd.f32 %v344_v18, %v335_v19 }
 0x1dd   :  { %v377_v21 = vmul.f32 -1.442695, %v345_v20 }
 0x1df   :  { %425 = vpow2.f32 %v377_v21 }
 0x1e9   :  { %v426_v22 = vpop.eup %425 }
 0x1ea   :  { %v349_v23 = vadd.f32 1.0, %v426_v22 }
 0x1ec   :  { %427 = vrcp.f32 %v349_v23 }
 0x1f6   :  { %v428_v24 = vpop.eup %427 }
 0x1f7   :  { %353 = vst.msk [vmem:[#allocation3] sm:$0x1] %vm352_vm3, %v428_v24 }
 0x1f8   :  { %440 = shalt.err (!%p437_p4)
}
 0x1f9   :  { %s441_s19 = scalar_lea.hbm %s594_s7, 16 }
 0x1fa   :  { %p442_p5 = scmp.ne.s32.totalorder %s594_s7, %s441_s19  ;;  %p445_p6 = scmp.lt.u32.totalorder %s441_s19, %s594_s7 }
 0x1fc   :  { %p447_p7 = pnand %p445_p6, %p442_p5 }
 0x1fe   :  { %450 = shalt.err (!%p447_p7)
}
 0x1ff   :  { %363 = dma.vmem_to_hbm [thread:$0]  %s361_s14, 16, %s594_s7, [#allocation4]  }
 0x200   :  { %451 = dma.done.wait [#allocation4], 16  }
 0x201   :  { %452 = vsyncadd [#allocation4], 4294967280 }
 0x202   :  { %367 = vsyncpa [#allocation4], 1 }

</bundles_post_ra>
